<compile_context>
chip_gen: v7x
topology: tpu7x:2x2x1
jax: 0.10.0
libtpu: 0.0.40
codegen_flags: <defaults>
</compile_context>

<pallas_src>
import jax
import jax.numpy as jnp
from jax.experimental import pallas as pl
from jax.experimental.pallas import tpu as pltpu


def _round_up(x: int, m: int) -> int:
    return ((x + m - 1) // m) * m


def _gcn_kernel(x_ref, adj_ref, w_ref, o_ref, acc_ref):
    # grid = (row tiles i, reduction tiles k); k is the inner/"arbitrary" axis.
    k = pl.program_id(1)

    @pl.when(k == 0)
    def _():
        acc_ref[...] = jnp.zeros_like(acc_ref)

    # acc[i_tile] += adj[i_tile, k_tile] @ x[k_tile]
    # bf16 operands, f32 accumulation on the MXU; per-step result never takes
    # a VMEM store/reload round trip.
    acc_ref[...] += jnp.dot(
        adj_ref[...], x_ref[...], preferred_element_type=jnp.float32
    )

    @pl.when(k == pl.num_programs(1) - 1)
    def _():
        # Epilogue (once per row tile): (adj @ x) @ w, ReLU, lane-dense store.
        ax = acc_ref[...].astype(jnp.bfloat16)
        out = jnp.dot(ax, w_ref[...], preferred_element_type=jnp.float32)
        o_ref[...] = jnp.maximum(out, 0.0).astype(o_ref.dtype)


@jax.jit
def graph_convolution(x, adj, weight):
    """relu(adj @ (x @ weight)); dropout p=0.0 -> identity (skipped)."""
    n, fin = x.shape
    fout = weight.shape[1]

    # Node-axis tile: multiple of 128 (lane-dense adj tiles), capped at 512 so
    # 2x double-buffered bf16 adj tiles stay tiny vs. VMEM on all generations.
    tile = min(512, _round_up(n, 128))
    n_pad = _round_up(n, tile)
    # Lane-dense output: pad out_features up to a multiple of 128.
    fout_pad = _round_up(fout, 128)

    # bf16 operands (MXU-native), f32 accumulation inside the kernel.
    x_b = x.astype(jnp.bfloat16)
    adj_b = adj.astype(jnp.bfloat16)
    w_b = weight.astype(jnp.bfloat16)

    if n_pad != n:
        x_b = jnp.pad(x_b, ((0, n_pad - n), (0, 0)))
        adj_b = jnp.pad(adj_b, ((0, n_pad - n), (0, n_pad - n)))
    if fout_pad != fout:
        # Pad the weight (not the input) with zero columns; padded output
        # columns are relu(0) = 0 and are sliced off below.
        w_b = jnp.pad(w_b, ((0, 0), (0, fout_pad - fout)))

    grid = (n_pad // tile, n_pad // tile)

    out = pl.pallas_call(
        _gcn_kernel,
        out_shape=jax.ShapeDtypeStruct((n_pad, fout_pad), jnp.float32),
        grid_spec=pltpu.PrefetchScalarGridSpec(
            num_scalar_prefetch=0,
            grid=grid,
            in_specs=[
                # x[k_tile]  : (tile, fin); fin block == full dim.
                pl.BlockSpec((tile, fin), lambda i, k: (k, 0)),
                # adj[i_tile, k_tile]
                pl.BlockSpec((tile, tile), lambda i, k: (i, k)),
                # weight: small, resident (same block every step -> no re-DMA).
                pl.BlockSpec((fin, fout_pad), lambda i, k: (0, 0)),
            ],
            # Output block depends only on i -> accumulator pattern across k.
            out_specs=pl.BlockSpec((tile, fout_pad), lambda i, k: (i, 0)),
            # f32 accumulator for (adj @ x) row tile, persists across k steps.
            scratch_shapes=[pltpu.VMEM((tile, fin), jnp.float32)],
        ),
        compiler_params=pltpu.CompilerParams(
            # Row tiles are independent -> "parallel" (megacore / v7x 2 TCs);
            # k is a reduction -> "arbitrary".
            dimension_semantics=("parallel", "arbitrary"),
        ),
    )(x_b, adj_b, w_b)

    return out[:n, :fout]


def _xavier_normal(key, fan_in, fan_out):
    # torch.nn.init.xavier_normal_: std = gain * sqrt(2 / (fan_in + fan_out)), gain=1
    std = (2.0 / (fan_in + fan_out)) ** 0.5
    return std * jax.random.normal(key, (fan_in, fan_out), dtype=jnp.float32)


if __name__ == "__main__":
    key = jax.random.PRNGKey(0)
    k_x, k_adj, k_w = jax.random.split(key, 3)

    n_nodes = 64
    in_features = 32
    out_features = 48

    x = jax.random.normal(k_x, (n_nodes, in_features), dtype=jnp.float32)

    # Deterministic symmetric row-normalized adjacency with self-loops.
    a = (jax.random.uniform(k_adj, (n_nodes, n_nodes)) > 0.8).astype(jnp.float32)
    a = jnp.maximum(a, a.T) + jnp.eye(n_nodes, dtype=jnp.float32)
    deg = jnp.sum(a, axis=1, keepdims=True)
    adj = a / deg

    # Deterministic xavier-normal weight init (module __init__).
    weight = _xavier_normal(k_w, in_features, out_features)

    out = graph_convolution(x, adj, weight)
    out = jax.block_until_ready(out)

    # f32 reference (dropout p=0.0 is identity). bf16 matmuls + reassociation
    # change results at the ~1e-2 level, so tolerance is loosened accordingly.
    ref = jnp.maximum(adj @ (x @ weight), 0.0)
    assert out.shape == (n_nodes, out_features)
    assert jnp.allclose(out, ref, atol=5e-2, rtol=5e-2), (
        float(jnp.max(jnp.abs(out - ref)))
    )

    print("KERNEL_OK")
</pallas_src>

<mosaic_0001>
module attributes {stable_mosaic.version = 11 : i64} {
  func.func @_gcn_kernel(%arg0: i32, %arg1: i32, %arg2: memref<128x32xbf16, #tpu.memory_space<vmem>>, %arg3: memref<128x128xbf16, #tpu.memory_space<vmem>>, %arg4: memref<32x128xbf16, #tpu.memory_space<vmem>>, %arg5: memref<128x128xf32, #tpu.memory_space<vmem>>, %arg6: memref<128x32xf32, #tpu.memory_space<vmem>>) attributes {dimension_semantics = [#tpu.dimension_semantics<parallel>, #tpu.dimension_semantics<arbitrary>], iteration_bounds = array<i64: 1, 1>, scalar_prefetch = 0 : i64, scratch_operands = 1 : i64, tpu.core_type = #tpu.core_type<tc>, window_params = [{transform_indices = @transform_0, window_bounds = array<i64: 128, 32>}, {transform_indices = @transform_1, window_bounds = array<i64: 128, 128>}, {pipeline_mode = #tpu.pipeline_mode<synchronous>, transform_indices = @transform_2, window_bounds = array<i64: 32, 128>}, {transform_indices = @transform_3, window_bounds = array<i64: 128, 128>}]} {
    %c0_i32 = arith.constant 0 : i32
    %0 = arith.cmpi eq, %arg1, %c0_i32 : i32
    %1 = arith.extui %0 : i1 to i32
    %c0_i32_0 = arith.constant 0 : i32
    %2 = arith.cmpi ne, %1, %c0_i32_0 : i32
    scf.if %2 {
      %cst_10 = arith.constant 0.000000e+00 : f32
      %12 = vector.broadcast %cst_10 : f32 to vector<128x32xf32>
      %c0_11 = arith.constant 0 : index
      %c0_12 = arith.constant 0 : index
      %13 = vector.load %arg6[%c0_11, %c0_12] : memref<128x32xf32, #tpu.memory_space<vmem>>, vector<128x32xf32>
      tpu.vector_store %arg6[%c0_11, %c0_12], %12 {strides = array<i32>} : memref<128x32xf32, #tpu.memory_space<vmem>>, vector<128x32xf32>,
    } else {
    }
    %c0 = arith.constant 0 : index
    %c0_1 = arith.constant 0 : index
    %3 = vector.load %arg6[%c0, %c0_1] : memref<128x32xf32, #tpu.memory_space<vmem>>, vector<128x32xf32>
    %c0_2 = arith.constant 0 : index
    %c0_3 = arith.constant 0 : index
    %4 = vector.load %arg3[%c0_2, %c0_3] : memref<128x128xbf16, #tpu.memory_space<vmem>>, vector<128x128xbf16>
    %c0_4 = arith.constant 0 : index
    %c0_5 = arith.constant 0 : index
    %5 = vector.load %arg2[%c0_4, %c0_5] : memref<128x32xbf16, #tpu.memory_space<vmem>>, vector<128x32xbf16>
    %cst = arith.constant dense<0.000000e+00> : vector<128x32xf32>
    %6 = tpu.matmul %4, %5, %cst {dimension_numbers = #tpu.dot_dimension_numbers<[1], [0], [0], [1], [0, 0, 1, 1], [], []>} : vector<128x128xbf16>, vector<128x32xbf16>, vector<128x32xf32> -> vector<128x32xf32>
    %7 = arith.addf %3, %6 : vector<128x32xf32>
    %c0_6 = arith.constant 0 : index
    %c0_7 = arith.constant 0 : index
    %8 = vector.load %arg6[%c0_6, %c0_7] : memref<128x32xf32, #tpu.memory_space<vmem>>, vector<128x32xf32>
    tpu.vector_store %arg6[%c0_6, %c0_7], %7 {strides = array<i32>} : memref<128x32xf32, #tpu.memory_space<vmem>>, vector<128x32xf32>,
    %c0_i32_8 = arith.constant 0 : i32
    %9 = arith.cmpi eq, %arg1, %c0_i32_8 : i32
    %10 = arith.extui %9 : i1 to i32
    %c0_i32_9 = arith.constant 0 : i32
    %11 = arith.cmpi ne, %10, %c0_i32_9 : i32
    scf.if %11 {
      %c0_10 = arith.constant 0 : index
      %c0_11 = arith.constant 0 : index
      %12 = vector.load %arg6[%c0_10, %c0_11] : memref<128x32xf32, #tpu.memory_space<vmem>>, vector<128x32xf32>
      %13 = arith.truncf %12 : vector<128x32xf32> to vector<128x32xbf16>
      %c0_12 = arith.constant 0 : index
      %c0_13 = arith.constant 0 : index
      %14 = vector.load %arg4[%c0_12, %c0_13] : memref<32x128xbf16, #tpu.memory_space<vmem>>, vector<32x128xbf16>
      %cst_14 = arith.constant dense<0.000000e+00> : vector<128x128xf32>
      %15 = tpu.matmul %13, %14, %cst_14 {dimension_numbers = #tpu.dot_dimension_numbers<[1], [0], [0], [1], [0, 0, 1, 1], [], []>} : vector<128x32xbf16>, vector<32x128xbf16>, vector<128x128xf32> -> vector<128x128xf32>
      %cst_15 = arith.constant 0.000000e+00 : f32
      %16 = vector.broadcast %cst_15 : f32 to vector<128x128xf32>
      %17 = arith.maximumf %15, %16 : vector<128x128xf32>
      %c0_16 = arith.constant 0 : index
      %c0_17 = arith.constant 0 : index
      %18 = vector.load %arg5[%c0_16, %c0_17] : memref<128x128xf32, #tpu.memory_space<vmem>>, vector<128x128xf32>
      tpu.vector_store %arg5[%c0_16, %c0_17], %17 {strides = array<i32>} : memref<128x128xf32, #tpu.memory_space<vmem>>, vector<128x128xf32>,
    } else {
    }
    return
  }
  func.func @transform_0(%arg0: i32, %arg1: i32) -> (i32, i32) {
    %c0_i32 = arith.constant 0 : i32
    %c0_i32_0 = arith.constant 0 : i32
    return %arg1, %c0_i32 : i32, i32
  }
  func.func @transform_1(%arg0: i32, %arg1: i32) -> (i32, i32) {
    %c0_i32 = arith.constant 0 : i32
    return %arg0, %arg1 : i32, i32
  }
  func.func @transform_2(%arg0: i32, %arg1: i32) -> (i32, i32) {
    %c0_i32 = arith.constant 0 : i32
    %c0_i32_0 = arith.constant 0 : i32
    %c0_i32_1 = arith.constant 0 : i32
    return %c0_i32, %c0_i32_0 : i32, i32
  }
  func.func @transform_3(%arg0: i32, %arg1: i32) -> (i32, i32) {
    %c0_i32 = arith.constant 0 : i32
    %c0_i32_0 = arith.constant 0 : i32
    return %arg0, %c0_i32 : i32, i32
  }
}

</mosaic_0001>

<bundles_post_ra>
// kernel: graph_convolution.1
= control target key start
LH: loop header
LB: loop body
LE: loop exit
PB: predicated region body
PF: predicated region fallthrough
CT: control target
= control target key end

     0   :  { %vm19_vm0 = vcmask 261120   ;;  %v633_v1 = vmov 0.0   ;;  %s796_s0 = inlined_call_operand.vmem [shape: bf16[128,32], index: 0, kind: input, shape index: {}]   ;;  %s797_s1 = inlined_call_operand.vmem [shape: bf16[128,128], index: 1, kind: input, shape index: {}]   ;;  %s798_s2 = inlined_call_operand.vmem [shape: bf16[32,128], index: 2, kind: input, shape index: {}]   ;;  %s799_s3 = inlined_call_operand.vmem [shape: f32[128,128], index: 3, kind: output, shape index: {}]  }
   0x1   :  { %v615_v0 = vld [vmem:[%s796_s0] sm:$0xff]   ;;  %22 = vst.msk [vmem:[#allocation2 + $0x10] sm:$0xff] %vm19_vm0, %v633_v1  ;;  %20 = vst.msk [vmem:[#allocation2] sm:$0xff] %vm19_vm0, %v633_v1  ;;  %v616_v2 = vld [vmem:[%s796_s0 + $0x8] sm:$0xff]  }
   0x2   :  { %21 = vst.msk [vmem:[#allocation2 + $0x8] sm:$0xff] %vm19_vm0, %v633_v1  ;;  %23 = vst.msk [vmem:[#allocation2 + $0x18] sm:$0xff] %vm19_vm0, %v633_v1  ;;  %562 = vmatprep.subr.bf16.mxu0 %v615_v0  ;;  %v617_v3 = vld [vmem:[%s796_s0 + $0x10] sm:$0xff]   ;;  %v618_v4 = vld [vmem:[%s796_s0 + $0x18] sm:$0xff]  }
   0x3   :  { %24 = vst.msk [vmem:[#allocation2 + $0x20] sm:$0xff] %vm19_vm0, %v633_v1  ;;  %25 = vst.msk [vmem:[#allocation2 + $0x28] sm:$0xff] %vm19_vm0, %v633_v1  ;;  %563 = vmatpush3.bf16.msra.mxu0 %v615_v0  ;;  %v623_v5 = vld [vmem:[%s797_s1] sm:$0xff]   ;;  %v620_v7 = vld [vmem:[%s796_s0 + $0x28] sm:$0xff]  }
   0x4   :  { %26 = vst.msk [vmem:[#allocation2 + $0x30] sm:$0xff] %vm19_vm0, %v633_v1  ;;  %27 = vst.msk [vmem:[#allocation2 + $0x38] sm:$0xff] %vm19_vm0, %v633_v1  ;;  %564 = vmatprep.subr.bf16.mxu0 %v616_v2  ;;  %578 = vmatprep.mubr.bf16.mxu0 %v623_v5  ;;  %v619_v6 = vld [vmem:[%s796_s0 + $0x20] sm:$0xff]   ;;  %v621_v8 = vld [vmem:[%s796_s0 + $0x30] sm:$0xff]  }
   0x5   :  { %28 = vst.msk [vmem:[#allocation2 + $0x40] sm:$0xff] %vm19_vm0, %v633_v1  ;;  %29 = vst.msk [vmem:[#allocation2 + $0x48] sm:$0xff] %vm19_vm0, %v633_v1  ;;  %v622_v9 = vld [vmem:[%s796_s0 + $0x38] sm:$0xff]   ;;  %v624_v10 = vld [vmem:[%s797_s1 + $0x8] sm:$0xff]  }
   0x6   :  { %30 = vst.msk [vmem:[#allocation2 + $0x50] sm:$0xff] %vm19_vm0, %v633_v1  ;;  %31 = vst.msk [vmem:[#allocation2 + $0x58] sm:$0xff] %vm19_vm0, %v633_v1  ;;  %v625_v11 = vld [vmem:[%s797_s1 + $0x10] sm:$0xff]   ;;  %v626_v12 = vld [vmem:[%s797_s1 + $0x18] sm:$0xff]  }
   0x7   :  { %32 = vst.msk [vmem:[#allocation2 + $0x60] sm:$0xff] %vm19_vm0, %v633_v1  ;;  %33 = vst.msk [vmem:[#allocation2 + $0x68] sm:$0xff] %vm19_vm0, %v633_v1  ;;  %565 = vmatpush3.bf16.msra.mxu0 %v616_v2  ;;  %v627_v13 = vld [vmem:[%s797_s1 + $0x20] sm:$0xff]   ;;  %v628_v14 = vld [vmem:[%s797_s1 + $0x28] sm:$0xff]  }
   0x8   :  { %34 = vst.msk [vmem:[#allocation2 + $0x70] sm:$0xff] %vm19_vm0, %v633_v1  ;;  %35 = vst.msk [vmem:[#allocation2 + $0x78] sm:$0xff] %vm19_vm0, %v633_v1  ;;  %566 = vmatprep.subr.bf16.mxu0 %v617_v3  ;;  %v629_v15 = vld [vmem:[%s797_s1 + $0x30] sm:$0xff]   ;;  %v630_v16 = vld [vmem:[%s797_s1 + $0x38] sm:$0xff]  }
   0x9   :  { %v631_v17 = vld [vmem:[%s798_s2] sm:$0xff]   ;;  %v632_v18 = vld [vmem:[%s798_s2 + $0x8] sm:$0xff]   ;;  %v38_v19 = vld [vmem:[#allocation2 + $0x10] sm:$0xff] }
   0xa   :  { %594 = vmatprep.subr.bf16.mxu1 %v631_v17  ;;  %v36_v20 = vld [vmem:[#allocation2] sm:$0xff]  ;;  %v39_v22 = vld [vmem:[#allocation2 + $0x18] sm:$0xff]  ;;  %v37_v25 = vld [vmem:[#allocation2 + $0x8] sm:$0xff] }
   0xb   :  { %567 = vmatpush3.bf16.msra.mxu0 %v617_v3  ;;  %595 = vmatpush3.bf16.msra.mxu1 %v631_v17  ;;  %v42_v31 = vld [vmem:[#allocation2 + $0x30] sm:$0xff]  ;;  %v40_v32 = vld [vmem:[#allocation2 + $0x20] sm:$0xff]  ;;  %v43_v34 = vld [vmem:[#allocation2 + $0x38] sm:$0xff] }
   0xc   :  { %568 = vmatprep.subr.bf16.mxu0 %v618_v4  ;;  %596 = vmatprep.subr.bf16.mxu1 %v632_v18  ;;  %v41_v37 = vld [vmem:[#allocation2 + $0x28] sm:$0xff]  ;;  %v44_v49 = vld [vmem:[#allocation2 + $0x40] sm:$0xff] }
   0xd   :  { %v46_v46 = vld [vmem:[#allocation2 + $0x50] sm:$0xff]  ;;  %v47_v52 = vld [vmem:[#allocation2 + $0x58] sm:$0xff]  ;;  %v45_v55 = vld [vmem:[#allocation2 + $0x48] sm:$0xff] }
   0xe   :  { %v48_v3 = vld [vmem:[#allocation2 + $0x60] sm:$0xff] }
   0xf   :  { %569 = vmatpush3.bf16.msra.mxu0 %v618_v4  ;;  %597 = vmatpush3.bf16.msra.mxu1 %v632_v18  ;;  %v50_v0 = vld [vmem:[#allocation2 + $0x70] sm:$0xff] }
  0x10   :  { %570 = vmatprep.subr.bf16.mxu0 %v619_v6 }
  0x13   :  { %571 = vmatpush3.bf16.msra.mxu0 %v619_v6  ;;  %v51_v6 = vld [vmem:[#allocation2 + $0x78] sm:$0xff] }
  0x14   :  { %572 = vmatprep.subr.bf16.mxu0 %v620_v7 }
  0x17   :  { %573 = vmatpush3.bf16.msra.mxu0 %v620_v7 }
  0x18   :  { %574 = vmatprep.subr.bf16.mxu0 %v621_v8 }
  0x1b   :  { %575 = vmatpush3.bf16.msra.mxu0 %v621_v8 }
  0x1c   :  { %576 = vmatprep.subr.bf16.mxu0 %v622_v9 }
  0x1f   :  { %577 = vmatpush3.bf16.msra.mxu0 %v622_v9  ;;  %v49_v9 = vld [vmem:[#allocation2 + $0x68] sm:$0xff] }
  0x22   :  { %579 = vmatmul.mubr.bf16.vlgmr.msra.gmra.mrb[0].mxu0 %v624_v10 }
  0x23   :  { %582 = vmatprep.mubr.bf16.mxu0 %v625_v11 }
  0x2a   :  { %583 = vmatmul.mubr.bf16.gmra.mrb[4].mxu0 %v626_v12 }
  0x2b   :  { %586 = vmatprep.mubr.bf16.mxu0 %v627_v13 }
  0x32   :  { %587 = vmatmul.mubr.bf16.gmra.mrb[8].mxu0 %v628_v14 }
  0x33   :  { %590 = vmatprep.mubr.bf16.mxu0 %v629_v15 }
  0x3a   :  { %591 = vmatmul.mubr.bf16.gmra.mrb[12].mxu0 %v630_v16 }
  0xf5   :  { %v580_v21 = vpop.f32.mrb[0].mxu0 }
  0xf6   :  { %v279_v23 = vadd.f32 %v580_v21, %v38_v19  ;;  %v214_v24 = vpop.f32.mrb[1].mxu0 }
  0xf7   :  { %v277_v26 = vadd.f32 %v214_v24, %v36_v20  ;;  %v581_v27 = vpop.f32.mrb[2].mxu0 }
  0xf8   :  { %296 = vst.msk [vmem:[#allocation2 + $0x10] sm:$0xff] %vm19_vm0, %v279_v23  ;;  %v280_v28 = vadd.f32 %v581_v27, %v39_v22  ;;  %v217_v29 = vpop.f32.mrb[3].mxu0 }
  0xf9   :  { %294 = vst.msk [vmem:[#allocation2] sm:$0xff] %vm19_vm0, %v277_v26  ;;  %v278_v30 = vadd.f32 %v217_v29, %v37_v25 }
  0xfa   :  { %297 = vst.msk [vmem:[#allocation2 + $0x18] sm:$0xff] %vm19_vm0, %v280_v28 }
  0xfb   :  { %295 = vst.msk [vmem:[#allocation2 + $0x8] sm:$0xff] %vm19_vm0, %v278_v30 }
  0xfd   :  { %v584_v33 = vpop.f32.mrb[4].mxu0 }
  0xfe   :  { %v283_v35 = vadd.f32 %v584_v33, %v42_v31  ;;  %v230_v36 = vpop.f32.mrb[5].mxu0 }
  0xff   :  { %v281_v38 = vadd.f32 %v230_v36, %v40_v32  ;;  %v585_v39 = vpop.f32.mrb[6].mxu0  ;;  %v315_v48 = vld [vmem:[#allocation2 + $0x10] sm:$0xff] }
 0x100   :  { %300 = vst.msk [vmem:[#allocation2 + $0x30] sm:$0xff] %vm19_vm0, %v283_v35  ;;  %v284_v40 = vadd.f32 %v585_v39, %v43_v34  ;;  %v233_v41 = vpop.f32.mrb[7].mxu0  ;;  %v313_v44 = vld [vmem:[#allocation2] sm:$0xff] }
 0x101   :  { %298 = vst.msk [vmem:[#allocation2 + $0x20] sm:$0xff] %vm19_vm0, %v281_v38  ;;  %v282_v42 = vadd.f32 %v233_v41, %v41_v37  ;;  %v316_v43 = vld [vmem:[#allocation2 + $0x18] sm:$0xff] }
 0x102   :  { %301 = vst.msk [vmem:[#allocation2 + $0x38] sm:$0xff] %vm19_vm0, %v284_v40  ;;  %v314_v45 = vld [vmem:[#allocation2 + $0x8] sm:$0xff]  ;;  %v330_v50 = vpack.c.bf16 %v316_v43, %v315_v48 }
 0x103   :  { %299 = vst.msk [vmem:[#allocation2 + $0x28] sm:$0xff] %vm19_vm0, %v282_v42  ;;  %v329_v47 = vpack.c.bf16 %v314_v45, %v313_v44 }
 0x105   :  { %v588_v51 = vpop.f32.mrb[8].mxu0  ;;  %598 = vmatprep.mubr.msk.bf16.mxu1 %vm19_vm0, %v329_v47 }
 0x106   :  { %v287_v53 = vadd.f32 %v588_v51, %v46_v46  ;;  %v246_v54 = vpop.f32.mrb[9].mxu0  ;;  %599 = vmatmul.mubr.msk.bf16.vlgmr.msra.gmra.mrb[0].mxu1 %vm19_vm0, %v330_v50 }
 0x107   :  { %v285_v56 = vadd.f32 %v246_v54, %v44_v49  ;;  %v589_v57 = vpop.f32.mrb[10].mxu0  ;;  %v319_v2 = vld [vmem:[#allocation2 + $0x30] sm:$0xff] }
 0x108   :  { %304 = vst.msk [vmem:[#allocation2 + $0x50] sm:$0xff] %vm19_vm0, %v287_v53  ;;  %v288_v58 = vadd.f32 %v589_v57, %v47_v52  ;;  %v249_v59 = vpop.f32.mrb[11].mxu0  ;;  %v317_v62 = vld [vmem:[#allocation2 + $0x20] sm:$0xff] }
 0x109   :  { %302 = vst.msk [vmem:[#allocation2 + $0x40] sm:$0xff] %vm19_vm0, %v285_v56  ;;  %v286_v60 = vadd.f32 %v249_v59, %v45_v55  ;;  %v320_v61 = vld [vmem:[#allocation2 + $0x38] sm:$0xff] }
 0x10a   :  { %305 = vst.msk [vmem:[#allocation2 + $0x58] sm:$0xff] %vm19_vm0, %v288_v58  ;;  %v318_v63 = vld [vmem:[#allocation2 + $0x28] sm:$0xff]  ;;  %v332_v4 = vpack.c.bf16 %v320_v61, %v319_v2 }
 0x10b   :  { %303 = vst.msk [vmem:[#allocation2 + $0x48] sm:$0xff] %vm19_vm0, %v286_v60  ;;  %v331_v1 = vpack.c.bf16 %v318_v63, %v317_v62 }
 0x10d   :  { %v592_v5 = vpop.f32.mrb[12].mxu0  ;;  %602 = vmatprep.mubr.msk.bf16.mxu1 %vm19_vm0, %v331_v1 }
 0x10e   :  { %v291_v7 = vadd.f32 %v592_v5, %v50_v0  ;;  %v262_v8 = vpop.f32.mrb[13].mxu0  ;;  %603 = vmatmul.mubr.msk.bf16.gmra.mrb[4].mxu1 %vm19_vm0, %v332_v4 }
 0x10f   :  { %v289_v10 = vadd.f32 %v262_v8, %v48_v3  ;;  %v593_v11 = vpop.f32.mrb[14].mxu0  ;;  %v323_v19 = vld [vmem:[#allocation2 + $0x50] sm:$0xff] }
 0x110   :  { %308 = vst.msk [vmem:[#allocation2 + $0x70] sm:$0xff] %vm19_vm0, %v291_v7  ;;  %v292_v12 = vadd.f32 %v593_v11, %v51_v6  ;;  %v265_v13 = vpop.f32.mrb[15].mxu0  ;;  %v321_v16 = vld [vmem:[#allocation2 + $0x40] sm:$0xff] }
 0x111   :  { %306 = vst.msk [vmem:[#allocation2 + $0x60] sm:$0xff] %vm19_vm0, %v289_v10  ;;  %v290_v14 = vadd.f32 %v265_v13, %v49_v9  ;;  %v324_v15 = vld [vmem:[#allocation2 + $0x58] sm:$0xff] }
 0x112   :  { %309 = vst.msk [vmem:[#allocation2 + $0x78] sm:$0xff] %vm19_vm0, %v292_v12  ;;  %v322_v17 = vld [vmem:[#allocation2 + $0x48] sm:$0xff]  ;;  %v334_v20 = vpack.c.bf16 %v324_v15, %v323_v19 }
 0x113   :  { %307 = vst.msk [vmem:[#allocation2 + $0x68] sm:$0xff] %vm19_vm0, %v290_v14  ;;  %v333_v18 = vpack.c.bf16 %v322_v17, %v321_v16 }
 0x115   :  { %606 = vmatprep.mubr.msk.bf16.mxu1 %vm19_vm0, %v333_v18 }
 0x116   :  { %607 = vmatmul.mubr.msk.bf16.gmra.mrb[8].mxu1 %vm19_vm0, %v334_v20 }
 0x117   :  { %v327_v25 = vld [vmem:[#allocation2 + $0x70] sm:$0xff] }
 0x118   :  { %v325_v22 = vld [vmem:[#allocation2 + $0x60] sm:$0xff] }
 0x119   :  { %v328_v21 = vld [vmem:[#allocation2 + $0x78] sm:$0xff] }
 0x11a   :  { %v326_v23 = vld [vmem:[#allocation2 + $0x68] sm:$0xff]  ;;  %v336_v26 = vpack.c.bf16 %v328_v21, %v327_v25 }
 0x11b   :  { %v335_v24 = vpack.c.bf16 %v326_v23, %v325_v22 }
 0x11d   :  { %610 = vmatprep.mubr.msk.bf16.mxu1 %vm19_vm0, %v335_v24 }
 0x11e   :  { %611 = vmatmul.mubr.msk.bf16.gmra.mrb[12].mxu1 %vm19_vm0, %v336_v26 }
 0x1d9   :  { %v600_v27 = vpop.f32.mrb[0].mxu1 }
 0x1da   :  { %v476_v28 = vmax.f32 %v600_v27, 0.0  ;;  %v411_v29 = vpop.f32.mrb[1].mxu1 }
 0x1db   :  { %v474_v30 = vmax.f32 %v411_v29, 0.0  ;;  %v601_v31 = vpop.f32.mrb[2].mxu1 }
 0x1dc   :  { %492 = vst [vmem:[%s799_s3 + $0x10] sm:$0xff] %v476_v28  ;;  %v477_v32 = vmax.f32 %v601_v31, 0.0  ;;  %v414_v33 = vpop.f32.mrb[3].mxu1 }
 0x1dd   :  { %490 = vst [vmem:[%s799_s3] sm:$0xff] %v474_v30  ;;  %v475_v34 = vmax.f32 %v414_v33, 0.0 }
 0x1de   :  { %493 = vst [vmem:[%s799_s3 + $0x18] sm:$0xff] %v477_v32 }
 0x1df   :  { %491 = vst [vmem:[%s799_s3 + $0x8] sm:$0xff] %v475_v34 }
 0x1e1   :  { %v604_v35 = vpop.f32.mrb[4].mxu1 }
 0x1e2   :  { %v480_v36 = vmax.f32 %v604_v35, 0.0  ;;  %v427_v37 = vpop.f32.mrb[5].mxu1 }
 0x1e3   :  { %v478_v38 = vmax.f32 %v427_v37, 0.0  ;;  %v605_v39 = vpop.f32.mrb[6].mxu1 }
 0x1e4   :  { %496 = vst [vmem:[%s799_s3 + $0x30] sm:$0xff] %v480_v36  ;;  %v481_v40 = vmax.f32 %v605_v39, 0.0  ;;  %v430_v41 = vpop.f32.mrb[7].mxu1 }
 0x1e5   :  { %494 = vst [vmem:[%s799_s3 + $0x20] sm:$0xff] %v478_v38  ;;  %v479_v42 = vmax.f32 %v430_v41, 0.0 }
 0x1e6   :  { %497 = vst [vmem:[%s799_s3 + $0x38] sm:$0xff] %v481_v40 }
 0x1e7   :  { %495 = vst [vmem:[%s799_s3 + $0x28] sm:$0xff] %v479_v42 }
 0x1e9   :  { %v608_v43 = vpop.f32.mrb[8].mxu1 }
 0x1ea   :  { %v484_v44 = vmax.f32 %v608_v43, 0.0  ;;  %v443_v45 = vpop.f32.mrb[9].mxu1 }
 0x1eb   :  { %v482_v46 = vmax.f32 %v443_v45, 0.0  ;;  %v609_v47 = vpop.f32.mrb[10].mxu1 }
 0x1ec   :  { %500 = vst [vmem:[%s799_s3 + $0x50] sm:$0xff] %v484_v44  ;;  %v485_v48 = vmax.f32 %v609_v47, 0.0  ;;  %v446_v49 = vpop.f32.mrb[11].mxu1 }
 0x1ed   :  { %498 = vst [vmem:[%s799_s3 + $0x40] sm:$0xff] %v482_v46  ;;  %v483_v50 = vmax.f32 %v446_v49, 0.0 }
 0x1ee   :  { %501 = vst [vmem:[%s799_s3 + $0x58] sm:$0xff] %v485_v48 }
 0x1ef   :  { %499 = vst [vmem:[%s799_s3 + $0x48] sm:$0xff] %v483_v50 }
 0x1f1   :  { %v612_v51 = vpop.f32.mrb[12].mxu1 }
 0x1f2   :  { %v488_v52 = vmax.f32 %v612_v51, 0.0  ;;  %v459_v53 = vpop.f32.mrb[13].mxu1 }
 0x1f3   :  { %v486_v54 = vmax.f32 %v459_v53, 0.0  ;;  %v613_v55 = vpop.f32.mrb[14].mxu1 }
 0x1f4   :  { %504 = vst [vmem:[%s799_s3 + $0x70] sm:$0xff] %v488_v52  ;;  %v489_v56 = vmax.f32 %v613_v55, 0.0  ;;  %v462_v57 = vpop.f32.mrb[15].mxu1 }
 0x1f5   :  { %502 = vst [vmem:[%s799_s3 + $0x60] sm:$0xff] %v486_v54  ;;  %v487_v58 = vmax.f32 %v462_v57, 0.0 }
 0x1f6   :  { %505 = vst [vmem:[%s799_s3 + $0x78] sm:$0xff] %v489_v56 }
 0x1f7   :  { %503 = vst [vmem:[%s799_s3 + $0x68] sm:$0xff] %v487_v58 }

</bundles_post_ra>
